<compile_context>
chip_gen: v7x
topology: tpu7x:2x2x1
jax: 0.10.0
libtpu: 0.0.40
codegen_flags: <defaults>
</compile_context>

<pallas_src>
import jax
import jax.numpy as jnp
from jax.experimental import pallas as pl
from jax.experimental.pallas import tpu as pltpu

hidden_size = 16
input_size = 784
n_classes = 10

N_PAD = 128        # pad the 10-wide output to a full lane group (dense stores)
TILE_B_MAX = 1024  # rows of x per grid step; bf16 -> ~1.6 MiB per buffer, so
                   # double-buffered tiles fit comfortably in v5e's 16 MiB scoped
                   # VMEM and v7x's 64 MiB physical VMEM.


def _round_up(x, m):
    return (x + m - 1) // m * m


def mlp_kernel(x_ref, w1_ref, b1_ref, w2_ref, b2_ref, w3_ref, b3_ref, o_ref):
    # Layer 1: bf16 operands on the MXU, f32 accumulation; bias + ReLU in f32.
    h = jnp.dot(x_ref[...], w1_ref[...], preferred_element_type=jnp.float32)
    h = jnp.maximum(h + b1_ref[...], 0.0)
    # Layers 2/3 are tiny (hidden=16); keep them in f32 — the MXU is nowhere near
    # the binding slot here (the kernel is bound by streaming x from HBM).
    h = jnp.dot(h, w2_ref[...], preferred_element_type=jnp.float32)
    h = jnp.maximum(h + b2_ref[...], 0.0)
    out = jnp.dot(h, w3_ref[...], preferred_element_type=jnp.float32)
    o_ref[...] = (out + b3_ref[...]).astype(o_ref.dtype)


@jax.jit
def neural_net_forward(x, params):
    """x: (B, input_size) f32. params: dict of (in,out) weights and (1,out) biases."""
    B = x.shape[0]
    # Tile must be a multiple of 16 (bf16 sublane packing); pad B up to a tile multiple.
    tile = min(TILE_B_MAX, _round_up(B, 16))
    b_pad = _round_up(B, tile)
    if b_pad != B:
        x = jnp.pad(x, ((0, b_pad - B), (0, 0)))

    # bf16 for the HBM-dominant operands; weights of layers 2/3 + biases stay f32.
    x_bf = x.astype(jnp.bfloat16)
    w1 = params["w1"].astype(jnp.bfloat16)
    b1 = params["b1"]
    w2 = params["w2"]
    b2 = params["b2"]
    # Lane-dense output path: zero-pad layer-3 columns 10 -> 128, slice afterwards.
    w3 = jnp.pad(params["w3"], ((0, 0), (0, N_PAD - n_classes)))
    b3 = jnp.pad(params["b3"], ((0, 0), (0, N_PAD - n_classes)))

    grid = (b_pad // tile,)
    weight_bytes = (w1.size * 2 + w2.size * 4 + w3.size * 4
                    + b1.size * 4 + b2.size * 4 + b3.size * 4)
    cost = pl.CostEstimate(
        flops=2 * b_pad * (input_size * hidden_size
                           + hidden_size * hidden_size
                           + hidden_size * N_PAD),
        transcendentals=0,
        bytes_accessed=b_pad * input_size * 2 + b_pad * N_PAD * 4 + weight_bytes,
    )

    out = pl.pallas_call(
        mlp_kernel,
        out_shape=jax.ShapeDtypeStruct((b_pad, N_PAD), jnp.float32),
        grid_spec=pltpu.PrefetchScalarGridSpec(
            num_scalar_prefetch=0,
            grid=grid,
            in_specs=[
                # streamed batch tile of x
                pl.BlockSpec((tile, input_size), lambda i: (i, 0)),
                # weights / biases: constant index_map -> resident in VMEM
                pl.BlockSpec((input_size, hidden_size), lambda i: (0, 0)),
                pl.BlockSpec((1, hidden_size), lambda i: (0, 0)),
                pl.BlockSpec((hidden_size, hidden_size), lambda i: (0, 0)),
                pl.BlockSpec((1, hidden_size), lambda i: (0, 0)),
                pl.BlockSpec((hidden_size, N_PAD), lambda i: (0, 0)),
                pl.BlockSpec((1, N_PAD), lambda i: (0, 0)),
            ],
            out_specs=pl.BlockSpec((tile, N_PAD), lambda i: (i, 0)),
        ),
        compiler_params=pltpu.CompilerParams(
            # batch tiles are independent -> megacore sharding on v7x,
            # harmless no-op on single-TC v5e/v6e.
            dimension_semantics=("parallel",),
        ),
        cost_estimate=cost,
    )(x_bf, w1, b1, w2, b2, w3, b3)

    return out[:B, :n_classes]


def init_params(key):
    """Deterministic init mimicking PyTorch nn.Linear default (uniform ±1/sqrt(fan_in))."""
    ks = jax.random.split(key, 6)

    def linear(kw, kb, fan_in, fan_out):
        bound = 1.0 / jnp.sqrt(fan_in)
        w = jax.random.uniform(kw, (fan_in, fan_out), jnp.float32, -bound, bound)
        b = jax.random.uniform(kb, (1, fan_out), jnp.float32, -bound, bound)
        return w, b

    w1, b1 = linear(ks[0], ks[1], input_size, hidden_size)
    w2, b2 = linear(ks[2], ks[3], hidden_size, hidden_size)
    w3, b3 = linear(ks[4], ks[5], hidden_size, n_classes)
    return {"w1": w1, "b1": b1, "w2": w2, "b2": b2, "w3": w3, "b3": b3}


def reference_forward(x, p):
    # Mirrors the kernel's precision policy: layer-1 operands are bf16-rounded,
    # accumulation / bias / ReLU and layers 2-3 stay in f32.
    xb = x.astype(jnp.bfloat16).astype(jnp.float32)
    w1 = p["w1"].astype(jnp.bfloat16).astype(jnp.float32)
    h = jnp.maximum(xb @ w1 + p["b1"], 0.0)
    h = jnp.maximum(h @ p["w2"] + p["b2"], 0.0)
    return h @ p["w3"] + p["b3"]


if __name__ == "__main__":
    key = jax.random.PRNGKey(0)
    k_x, k_p = jax.random.split(key)
    B = 8
    x = jax.random.normal(k_x, (B, input_size), jnp.float32)
    params = init_params(k_p)

    out = neural_net_forward(x, params)
    out = jax.block_until_ready(out)

    ref = reference_forward(x, params)
    assert out.shape == (B, n_classes)
    assert jnp.allclose(out, ref, atol=1e-3, rtol=1e-3), float(jnp.max(jnp.abs(out - ref)))
    print("KERNEL_OK")
</pallas_src>

<mosaic_0001>
module attributes {stable_mosaic.version = 11 : i64} {
  func.func @mlp_kernel(%arg0: i32, %arg1: memref<16x784xbf16, #tpu.memory_space<vmem>>, %arg2: memref<784x16xbf16, #tpu.memory_space<vmem>>, %arg3: memref<1x16xf32, #tpu.memory_space<vmem>>, %arg4: memref<16x16xf32, #tpu.memory_space<vmem>>, %arg5: memref<1x16xf32, #tpu.memory_space<vmem>>, %arg6: memref<16x128xf32, #tpu.memory_space<vmem>>, %arg7: memref<1x128xf32, #tpu.memory_space<vmem>>, %arg8: memref<16x128xf32, #tpu.memory_space<vmem>>) attributes {dimension_semantics = [#tpu.dimension_semantics<parallel>], iteration_bounds = array<i64: 1>, scalar_prefetch = 0 : i64, scratch_operands = 0 : i64, tpu.core_type = #tpu.core_type<tc>, window_params = [{transform_indices = @transform_0, window_bounds = array<i64: 16, 784>}, {pipeline_mode = #tpu.pipeline_mode<synchronous>, transform_indices = @transform_1, window_bounds = array<i64: 784, 16>}, {pipeline_mode = #tpu.pipeline_mode<synchronous>, transform_indices = @transform_2, window_bounds = array<i64: 1, 16>}, {pipeline_mode = #tpu.pipeline_mode<synchronous>, transform_indices = @transform_3, window_bounds = array<i64: 16, 16>}, {pipeline_mode = #tpu.pipeline_mode<synchronous>, transform_indices = @transform_4, window_bounds = array<i64: 1, 16>}, {pipeline_mode = #tpu.pipeline_mode<synchronous>, transform_indices = @transform_5, window_bounds = array<i64: 16, 128>}, {pipeline_mode = #tpu.pipeline_mode<synchronous>, transform_indices = @transform_6, window_bounds = array<i64: 1, 128>}, {transform_indices = @transform_7, window_bounds = array<i64: 16, 128>}]} {
    %c0 = arith.constant 0 : index
    %c0_0 = arith.constant 0 : index
    %0 = vector.load %arg1[%c0, %c0_0] : memref<16x784xbf16, #tpu.memory_space<vmem>>, vector<16x784xbf16>
    %c0_1 = arith.constant 0 : index
    %c0_2 = arith.constant 0 : index
    %1 = vector.load %arg2[%c0_1, %c0_2] : memref<784x16xbf16, #tpu.memory_space<vmem>>, vector<784x16xbf16>
    %cst = arith.constant dense<0.000000e+00> : vector<16x16xf32>
    %2 = tpu.matmul %0, %1, %cst {dimension_numbers = #tpu.dot_dimension_numbers<[1], [0], [0], [1], [0, 0, 1, 1], [], []>} : vector<16x784xbf16>, vector<784x16xbf16>, vector<16x16xf32> -> vector<16x16xf32>
    %c0_3 = arith.constant 0 : index
    %c0_4 = arith.constant 0 : index
    %3 = vector.load %arg3[%c0_3, %c0_4] : memref<1x16xf32, #tpu.memory_space<vmem>>, vector<1x16xf32>
    %4 = vector.broadcast %3 : vector<1x16xf32> to vector<16x16xf32>
    %5 = arith.addf %2, %4 : vector<16x16xf32>
    %cst_5 = arith.constant 0.000000e+00 : f32
    %6 = vector.broadcast %cst_5 : f32 to vector<16x16xf32>
    %7 = arith.maximumf %5, %6 : vector<16x16xf32>
    %c0_6 = arith.constant 0 : index
    %c0_7 = arith.constant 0 : index
    %8 = vector.load %arg4[%c0_6, %c0_7] : memref<16x16xf32, #tpu.memory_space<vmem>>, vector<16x16xf32>
    %cst_8 = arith.constant dense<0.000000e+00> : vector<16x16xf32>
    %9 = tpu.matmul %7, %8, %cst_8 {dimension_numbers = #tpu.dot_dimension_numbers<[1], [0], [0], [1], [0, 0, 1, 1], [], []>} : vector<16x16xf32>, vector<16x16xf32>, vector<16x16xf32> -> vector<16x16xf32>
    %c0_9 = arith.constant 0 : index
    %c0_10 = arith.constant 0 : index
    %10 = vector.load %arg5[%c0_9, %c0_10] : memref<1x16xf32, #tpu.memory_space<vmem>>, vector<1x16xf32>
    %11 = vector.broadcast %10 : vector<1x16xf32> to vector<16x16xf32>
    %12 = arith.addf %9, %11 : vector<16x16xf32>
    %cst_11 = arith.constant 0.000000e+00 : f32
    %13 = vector.broadcast %cst_11 : f32 to vector<16x16xf32>
    %14 = arith.maximumf %12, %13 : vector<16x16xf32>
    %c0_12 = arith.constant 0 : index
    %c0_13 = arith.constant 0 : index
    %15 = vector.load %arg6[%c0_12, %c0_13] : memref<16x128xf32, #tpu.memory_space<vmem>>, vector<16x128xf32>
    %cst_14 = arith.constant dense<0.000000e+00> : vector<16x128xf32>
    %16 = tpu.matmul %14, %15, %cst_14 {dimension_numbers = #tpu.dot_dimension_numbers<[1], [0], [0], [1], [0, 0, 1, 1], [], []>} : vector<16x16xf32>, vector<16x128xf32>, vector<16x128xf32> -> vector<16x128xf32>
    %c0_15 = arith.constant 0 : index
    %c0_16 = arith.constant 0 : index
    %17 = vector.load %arg7[%c0_15, %c0_16] : memref<1x128xf32, #tpu.memory_space<vmem>>, vector<1x128xf32>
    %18 = vector.broadcast %17 : vector<1x128xf32> to vector<16x128xf32>
    %19 = arith.addf %16, %18 : vector<16x128xf32>
    %c0_17 = arith.constant 0 : index
    %c0_18 = arith.constant 0 : index
    %20 = vector.load %arg8[%c0_17, %c0_18] : memref<16x128xf32, #tpu.memory_space<vmem>>, vector<16x128xf32>
    tpu.vector_store %arg8[%c0_17, %c0_18], %19 {strides = array<i32>} : memref<16x128xf32, #tpu.memory_space<vmem>>, vector<16x128xf32>,
    return
  }
  func.func @transform_0(%arg0: i32) -> (i32, i32) {
    %c0_i32 = arith.constant 0 : i32
    %c0_i32_0 = arith.constant 0 : i32
    return %arg0, %c0_i32 : i32, i32
  }
  func.func @transform_1(%arg0: i32) -> (i32, i32) {
    %c0_i32 = arith.constant 0 : i32
    %c0_i32_0 = arith.constant 0 : i32
    %c0_i32_1 = arith.constant 0 : i32
    return %c0_i32, %c0_i32_0 : i32, i32
  }
  func.func @transform_2(%arg0: i32) -> (i32, i32) {
    %c0_i32 = arith.constant 0 : i32
    %c0_i32_0 = arith.constant 0 : i32
    %c0_i32_1 = arith.constant 0 : i32
    return %c0_i32, %c0_i32_0 : i32, i32
  }
  func.func @transform_3(%arg0: i32) -> (i32, i32) {
    %c0_i32 = arith.constant 0 : i32
    %c0_i32_0 = arith.constant 0 : i32
    %c0_i32_1 = arith.constant 0 : i32
    return %c0_i32, %c0_i32_0 : i32, i32
  }
  func.func @transform_4(%arg0: i32) -> (i32, i32) {
    %c0_i32 = arith.constant 0 : i32
    %c0_i32_0 = arith.constant 0 : i32
    %c0_i32_1 = arith.constant 0 : i32
    return %c0_i32, %c0_i32_0 : i32, i32
  }
  func.func @transform_5(%arg0: i32) -> (i32, i32) {
    %c0_i32 = arith.constant 0 : i32
    %c0_i32_0 = arith.constant 0 : i32
    %c0_i32_1 = arith.constant 0 : i32
    return %c0_i32, %c0_i32_0 : i32, i32
  }
  func.func @transform_6(%arg0: i32) -> (i32, i32) {
    %c0_i32 = arith.constant 0 : i32
    %c0_i32_0 = arith.constant 0 : i32
    %c0_i32_1 = arith.constant 0 : i32
    return %c0_i32, %c0_i32_0 : i32, i32
  }
  func.func @transform_7(%arg0: i32) -> (i32, i32) {
    %c0_i32 = arith.constant 0 : i32
    %c0_i32_0 = arith.constant 0 : i32
    return %arg0, %c0_i32 : i32, i32
  }
}

</mosaic_0001>

<bundles_post_ra>
// kernel: neural_net_forward.1
= control target key start
LH: loop header
LB: loop body
LE: loop exit
PB: predicated region body
PF: predicated region fallthrough
CT: control target
= control target key end

     0   :  { %v1056_v38 = vmov 0.0   ;;  %vm1057_vm0 = vmmov 0   ;;  %vm469_vm1 = vcmask 130048   ;;  %s1298_s1 = inlined_call_operand.vmem [shape: bf16[784,16], index: 1, kind: input, shape index: {}]   ;;  %s1299_s0 = inlined_call_operand.vmem [shape: bf16[16,784], index: 0, kind: input, shape index: {}]   ;;  %s1300_s3 = inlined_call_operand.vmem [shape: f32[16,16], index: 3, kind: input, shape index: {}]   ;;  %s1301_s2 = inlined_call_operand.vmem [shape: f32[1,16], index: 2, kind: input, shape index: {}]   ;;  %s1302_s5 = inlined_call_operand.vmem [shape: f32[16,128], index: 5, kind: input, shape index: {}]   ;;  %s1303_s4 = inlined_call_operand.vmem [shape: f32[1,16], index: 4, kind: input, shape index: {}]   ;;  %s1304_s6 = inlined_call_operand.vmem [shape: f32[1,128], index: 6, kind: input, shape index: {}]   ;;  %s1305_s7 = inlined_call_operand.vmem [shape: f32[16,128], index: 7, kind: output, shape index: {}]  }
   0x1   :  { %v997_v0 = vld [vmem:[%s1298_s1 + $0x40] sm:$0xff]   ;;  %v1001_v4 = vld [vmem:[%s1298_s1 + $0x48] sm:$0xff]   ;;  %v1005_v8 = vld [vmem:[%s1298_s1 + $0x50] sm:$0xff]  }
   0x2   :  { %v998_v1 = vld [vmem:[%s1298_s1] sm:$0xff]   ;;  %891 = vmatprep.subr.bf16.mxu0 %v997_v0  ;;  %v1002_v5 = vld [vmem:[%s1298_s1 + $0x8] sm:$0xff]   ;;  %v1006_v9 = vld [vmem:[%s1298_s1 + $0x10] sm:$0xff]  }
   0x3   :  { %v999_v2 = vld [vmem:[%s1298_s1 + $0xc0] sm:$0xff]   ;;  %892 = vmatpush3.bf16.msra.mxu0 %v998_v1  ;;  %v1003_v6 = vld [vmem:[%s1298_s1 + $0xc8] sm:$0xff]   ;;  %v1007_v10 = vld [vmem:[%s1298_s1 + $0xd0] sm:$0xff]  }
   0x4   :  { %v1000_v3 = vld [vmem:[%s1298_s1 + $0x80] sm:$0xff]   ;;  %913 = vmatprep.subr.bf16.mxu1 %v999_v2  ;;  %893 = vmatprep.subr.bf16.mxu0 %v1001_v4  ;;  %v1004_v7 = vld [vmem:[%s1298_s1 + $0x88] sm:$0xff]   ;;  %v1008_v11 = vld [vmem:[%s1298_s1 + $0x90] sm:$0xff]  }
   0x5   :  { %914 = vmatpush3.bf16.msra.mxu1 %v1000_v3  ;;  %v1009_v12 = vld [vmem:[%s1298_s1 + $0x58] sm:$0xff]   ;;  %v1013_v16 = vld [vmem:[%s1298_s1 + $0x60] sm:$0xff]   ;;  %v1017_v20 = vld [vmem:[%s1298_s1 + $0x68] sm:$0xff]  }
   0x6   :  { %915 = vmatprep.subr.bf16.mxu1 %v1003_v6  ;;  %v1010_v13 = vld [vmem:[%s1298_s1 + $0x18] sm:$0xff]   ;;  %v1014_v17 = vld [vmem:[%s1298_s1 + $0x20] sm:$0xff]   ;;  %v1018_v21 = vld [vmem:[%s1298_s1 + $0x28] sm:$0xff]  }
   0x7   :  { %894 = vmatpush3.bf16.msra.mxu0 %v1002_v5  ;;  %v1011_v14 = vld [vmem:[%s1298_s1 + $0xd8] sm:$0xff]   ;;  %v1015_v18 = vld [vmem:[%s1298_s1 + $0xe0] sm:$0xff]   ;;  %v1019_v22 = vld [vmem:[%s1298_s1 + $0xe8] sm:$0xff]  }
   0x8   :  { %895 = vmatprep.subr.bf16.mxu0 %v1005_v8  ;;  %v1012_v15 = vld [vmem:[%s1298_s1 + $0x98] sm:$0xff]   ;;  %v1016_v19 = vld [vmem:[%s1298_s1 + $0xa0] sm:$0xff]   ;;  %v1020_v23 = vld [vmem:[%s1298_s1 + $0xa8] sm:$0xff]  }
   0x9   :  { %916 = vmatpush3.bf16.msra.mxu1 %v1004_v7  ;;  %v1021_v24 = vld [vmem:[%s1298_s1 + $0x70] sm:$0xff]   ;;  %v1025_v28 = vld [vmem:[%s1298_s1 + $0x78] sm:$0xff]   ;;  %v1030_v32 = vld [vmem:[%s1299_s0 + $0x4] ss:$28 sps:$4 sm:$0xff]  }
   0xa   :  { %917 = vmatprep.subr.bf16.mxu1 %v1007_v10  ;;  %v1022_v25 = vld [vmem:[%s1298_s1 + $0x30] sm:$0xff]   ;;  %v1026_v29 = vld [vmem:[%s1298_s1 + $0x38] sm:$0xff]   ;;  %505 = vmatprep.mubr.bf16.mxu0 %v1030_v32  ;;  %v1032_v34 = vld [vmem:[%s1298_s1 + $0x140] sm:$0xff]  }
   0xb   :  { %896 = vmatpush3.bf16.msra.mxu0 %v1006_v9  ;;  %v1023_v26 = vld [vmem:[%s1298_s1 + $0xf0] sm:$0xff]   ;;  %v1027_v30 = vld [vmem:[%s1298_s1 + $0xf8] sm:$0xff]   ;;  %v1033_v35 = vld [vmem:[%s1299_s0 + $0x8] ss:$28 sps:$4 sm:$0xff]  }
   0xc   :  { %897 = vmatprep.subr.bf16.mxu0 %v1009_v12  ;;  %v1024_v27 = vld [vmem:[%s1298_s1 + $0xb0] sm:$0xff]   ;;  %v1028_v31 = vld [vmem:[%s1299_s0] ss:$28 sps:$4 sm:$0xff]   ;;  %v1035_v36 = vld [vmem:[%s1299_s0 + $0xc] ss:$28 sps:$4 sm:$0xff]  }
   0xd   :  { %918 = vmatpush3.bf16.msra.mxu1 %v1008_v11  ;;  %v1031_v33 = vld [vmem:[%s1298_s1 + $0xb8] sm:$0xff]   ;;  %v1036_v37 = vld [vmem:[%s1298_s1 + $0x100] sm:$0xff]   ;;  %546 = vmatprep.mubr.bf16.mxu1 %v1035_v36  ;;  %v1037_v39 = vld [vmem:[%s1298_s1 + $0x148] sm:$0xff]  }
   0xe   :  { %919 = vmatprep.subr.bf16.mxu1 %v1011_v14  ;;  %v1038_v40 = vld [vmem:[%s1298_s1 + $0x108] sm:$0xff]   ;;  %v1039_v41 = vld [vmem:[%s1298_s1 + $0x150] sm:$0xff]   ;;  %v1041_v43 = vld [vmem:[%s1298_s1 + $0x158] sm:$0xff]  }
   0xf   :  { %898 = vmatpush3.bf16.msra.mxu0 %v1010_v13  ;;  %v1040_v42 = vld [vmem:[%s1298_s1 + $0x110] sm:$0xff]   ;;  %v1042_v44 = vld [vmem:[%s1298_s1 + $0x118] sm:$0xff]   ;;  %v1043_v45 = vld [vmem:[%s1298_s1 + $0x160] sm:$0xff]  }
  0x10   :  { %899 = vmatprep.subr.bf16.mxu0 %v1013_v16  ;;  %v1044_v46 = vld [vmem:[%s1298_s1 + $0x120] sm:$0xff]   ;;  %v1045_v47 = vld [vmem:[%s1298_s1 + $0x168] sm:$0xff]   ;;  %v1054_v49 = vld [vmem:[%s1299_s0 + $0x14] ss:$28 sps:$4 sm:$0xff]  }
  0x11   :  { %920 = vmatpush3.bf16.msra.mxu1 %v1012_v15  ;;  %v1051_v48 = vld [vmem:[%s1298_s1 + $0x180] sm:$0xff]   ;;  %v1055_v50 = vld [vmem:[%s1299_s0 + $0x18] ss:$28 sps:$4 sm:$0xff]   ;;  %v1046_v51 = vld [vmem:[%s1298_s1 + $0x128] sm:$0xff]  }
  0x12   :  { %921 = vmatprep.subr.bf16.mxu1 %v1015_v18  ;;  %v1047_v52 = vld [vmem:[%s1298_s1 + $0x170] sm:$0xff]   ;;  %v1049_v54 = vld [vmem:[%s1298_s1 + $0x178] sm:$0xff]   ;;  %v639_v57 = vld [vmem:[%s1300_s3] sm:$0xff] }
  0x13   :  { %900 = vmatpush3.bf16.msra.mxu0 %v1014_v17  ;;  %v1048_v53 = vld [vmem:[%s1298_s1 + $0x130] sm:$0xff]   ;;  %v1050_v55 = vld [vmem:[%s1298_s1 + $0x138] sm:$0xff]   ;;  %v640_v58 = vld [vmem:[%s1300_s3 + $0x8] sm:$0xff] }
  0x14   :  { %901 = vmatprep.subr.bf16.mxu0 %v1017_v20  ;;  %v1052_v56 = vld [vmem:[%s1299_s0 + $0x10] ss:$28 sps:$4 sm:$0xff]   ;;  %v987_v59 = vpack.c.bf16 %v640_v58, %v639_v57  ;;  %v827_v61 = vld [vmem:[%s1301_s2] ss:$0 sm:$0xff] }
  0x15   :  { %922 = vmatpush3.bf16.msra.mxu1 %v1016_v19  ;;  %v885_v32 = vld [vmem:[%s1303_s4] ss:$0 sm:$0xff] }
  0x16   :  { %923 = vmatprep.subr.bf16.mxu1 %v1019_v22 }
  0x17   :  { %902 = vmatpush3.bf16.msra.mxu0 %v1018_v21 }
  0x18   :  { %903 = vmatprep.subr.bf16.mxu0 %v1021_v24 }
  0x19   :  { %924 = vmatpush3.bf16.msra.mxu1 %v1020_v23 }
  0x1a   :  { %925 = vmatprep.subr.bf16.mxu1 %v1023_v26 }
  0x1b   :  { %904 = vmatpush3.bf16.msra.mxu0 %v1022_v25 }
  0x1c   :  { %905 = vmatprep.subr.bf16.mxu0 %v1025_v28 }
  0x1d   :  { %926 = vmatpush3.bf16.msra.mxu1 %v1024_v27 }
  0x1e   :  { %927 = vmatprep.subr.bf16.mxu1 %v1027_v30  ;;  %v732_v30 = vld [vmem:[%s1302_s5 + $0x8] sm:$0xff] }
  0x1f   :  { %906 = vmatpush3.bf16.msra.mxu0 %v1026_v29  ;;  %v731_v29 = vld [vmem:[%s1302_s5] sm:$0xff] }
  0x20   :  { %935 = vmatprep.subr.bf16.mxu0 %v1032_v34 }
  0x21   :  { %928 = vmatpush3.bf16.msra.mxu1 %v1031_v33 }
  0x22   :  { %506 = vmatmul.mubr.bf16.vlgmr.msra.gmra.mrb[0].mxu0 %v1028_v31  ;;  %967 = vmatprep.subr.bf16.mxu1 %v1056_v38  ;;  %v991_v31 = vpack.c.bf16 %v732_v30, %v731_v29 }
  0x23   :  { %936 = vmatpush3.bf16.msra.mxu0 %v1036_v37  ;;  %587 = vmatprep.mubr.bf16.mxu0 %v1054_v49 }
  0x24   :  { %547 = vmatmul.mubr.bf16.vlgmr.msra.gmra.mrb[0].mxu1 %v1033_v35  ;;  %937 = vmatprep.subr.bf16.mxu0 %v1037_v39  ;;  %v888_v39 = vld [vmem:[%s1304_s6] ss:$0 sm:$0xff] }
  0x25   :  { %969 = vmatprep.mubr.msk.bf16.mxu1 %vm1057_vm0, %v1056_v38  ;;  %968 = vmatpush3.bf16.msra.mxu1 %v1051_v48 }
  0x26   :  { %988 = vmatprep.subr.bf16.mxu1 %v987_v59 }
  0x27   :  { %938 = vmatpush3.bf16.msra.mxu0 %v1038_v40 }
  0x28   :  { %939 = vmatprep.subr.bf16.mxu0 %v1039_v41 }
  0x2b   :  { %940 = vmatpush3.bf16.msra.mxu0 %v1040_v42 }
  0x2c   :  { %941 = vmatprep.subr.bf16.mxu0 %v1041_v43  ;;  %970 = vmatmul.mubr.msk.bf16.vlgmr.msra.gmra.mrb[4].mxu1 %vm469_vm1, %v1055_v50 }
  0x2d   :  { %990 = vmatpush3.bf16.msra.mxu1 %v987_v59 }
  0x2e   :  { %992 = vmatprep.subr.bf16.mxu1 %v991_v31 }
  0x2f   :  { %942 = vmatpush3.bf16.msra.mxu0 %v1042_v44 }
  0x30   :  { %943 = vmatprep.subr.bf16.mxu0 %v1043_v45 }
  0x33   :  { %944 = vmatpush3.bf16.msra.mxu0 %v1044_v46 }
  0x34   :  { %945 = vmatprep.subr.bf16.mxu0 %v1045_v47 }
  0x37   :  { %946 = vmatpush3.bf16.msra.mxu0 %v1046_v51 }
  0x38   :  { %947 = vmatprep.subr.bf16.mxu0 %v1047_v52 }
  0x3b   :  { %948 = vmatpush3.bf16.msra.mxu0 %v1048_v53 }
  0x3c   :  { %949 = vmatprep.subr.bf16.mxu0 %v1049_v54 }
  0x3f   :  { %950 = vmatpush3.bf16.msra.mxu0 %v1050_v55 }
  0x42   :  { %588 = vmatmul.mubr.bf16.vlgmr.msra.gmra.mrb[4].mxu0 %v1052_v56 }
  0xf5   :  { %v907_v60 = vpop.f32.mrb[0].mxu0 }
  0xf6   :  { %v908_v62 = vpop.f32.mrb[1].mxu0 }
  0xf7   :  { %v909_v63 = vadd.f32 %v908_v62, %v907_v60  ;;  %v910_v0 = vpop.f32.mrb[2].mxu0  ;;  %v929_v1 = vpop.f32.mrb[0].mxu1 }
  0xf8   :  { %v911_v2 = vpop.f32.mrb[3].mxu0  ;;  %v930_v5 = vpop.f32.mrb[1].mxu1 }
  0xf9   :  { %v508_v3 = vadd.f32 %v909_v63, %v827_v61  ;;  %v912_v4 = vadd.f32 %v911_v2, %v910_v0  ;;  %v931_v6 = vadd.f32 %v930_v5, %v929_v1  ;;  %v932_v7 = vpop.f32.mrb[2].mxu1 }
  0xfa   :  { %v933_v9 = vpop.f32.mrb[3].mxu1 }
  0xfb   :  { %v511_v8 = vadd.f32 %v912_v4, %v827_v61  ;;  %v549_v10 = vadd.f32 %v931_v6, %v508_v3  ;;  %v934_v11 = vadd.f32 %v933_v9, %v932_v7 }
  0xfd   :  { %v552_v12 = vadd.f32 %v934_v11, %v511_v8 }
  0xff   :  { %v630_v13 = vpop.f32.mrb[4].mxu1 }
 0x100   :  { %v971_v14 = vpop.f32.mrb[5].mxu1 }
 0x101   :  { %v633_v15 = vpop.f32.mrb[6].mxu1 }
 0x102   :  { %v972_v16 = vpop.f32.mrb[7].mxu1 }
 0x115   :  { %v951_v17 = vpop.f32.mrb[4].mxu0 }
 0x116   :  { %v952_v18 = vpop.f32.mrb[5].mxu0 }
 0x117   :  { %v953_v19 = vadd.f32 %v952_v18, %v951_v17  ;;  %v954_v20 = vpop.f32.mrb[6].mxu0 }
 0x118   :  { %v955_v21 = vpop.f32.mrb[7].mxu0 }
 0x119   :  { %v590_v22 = vadd.f32 %v953_v19, %v549_v10  ;;  %v956_v23 = vadd.f32 %v955_v21, %v954_v20 }
 0x11b   :  { %v631_v24 = vadd.f32 %v630_v13, %v590_v22  ;;  %v593_v25 = vadd.f32 %v956_v23, %v552_v12 }
 0x11d   :  { %v637_v26 = vmax.f32 %v631_v24, 0.0  ;;  %v634_v27 = vadd.f32 %v633_v15, %v593_v25 }
 0x11f   :  { %v638_v28 = vmax.f32 %v634_v27, 0.0  ;;  %977 = vmatprep.mubr.msk.f32.mxu1 %vm469_vm1, %v637_v26 }
 0x121   :  { %978 = vmatmul.mubr.msk.f32.vlgmr.msra.gmra.mrb[8].mxu1 %vm469_vm1, %v638_v28 }
 0x122   :  { %994 = vmatpush3.bf16.msra.mxu1 %v991_v31 }
 0x1f4   :  { %v979_v33 = vpop.f32.mrb[8].mxu1 }
 0x1f5   :  { %v726_v34 = vadd.f32 %v979_v33, %v885_v32  ;;  %v720_v35 = vpop.f32.mrb[9].mxu1 }
 0x1f6   :  { %v721_v36 = vadd.f32 %v885_v32, %v720_v35 }
 0x1f7   :  { %v730_v38 = vmax.f32 %v726_v34, 0.0 }
 0x1f8   :  { %v729_v37 = vmax.f32 %v721_v36, 0.0 }
 0x1fa   :  { %984 = vmatprep.mubr.msk.f32.mxu1 %vm469_vm1, %v729_v37 }
 0x1fb   :  { %985 = vmatmul.mubr.msk.f32.vlgmr.msra.gmra.mrb[10].mxu1 %vm469_vm1, %v730_v38 }
 0x2ce   :  { %v986_v40 = vpop.f32.mrb[10].mxu1 }
 0x2cf   :  { %v818_v41 = vadd.f32 %v986_v40, %v888_v39  ;;  %v812_v42 = vpop.f32.mrb[11].mxu1 }
 0x2d0   :  { %v813_v43 = vadd.f32 %v888_v39, %v812_v42 }
 0x2d1   :  { %822 = vst [vmem:[%s1305_s7 + $0x8] sm:$0xff] %v818_v41 }
 0x2d2   :  { %821 = vst [vmem:[%s1305_s7] sm:$0xff] %v813_v43 }

</bundles_post_ra>
